<compile_context>
chip_gen: v7x
topology: tpu7x:2x2x1
jax: 0.10.0
libtpu: 0.0.40
codegen_flags: <defaults>
</compile_context>

<pallas_src>
import functools

import jax
import jax.numpy as jnp
from jax import lax
from jax.experimental import pallas as pl
from jax.experimental.pallas import tpu as pltpu


def _round_up(v, m):
    return (v + m - 1) // m * m


def _conv3d_multi_kernel(xa_ref, xb_ref, w_ref, b_ref, o_ref,
                         xwide_ref, xcol_ref, *, K, H, W, Cin, TM, KT):
    """One (batch, spatial-tile) grid step.

    xa_ref   : (1, Cin, TM)    current flat-spatial tile of x (bf16)
    xb_ref   : (1, Cin, TM)    next tile = halo (all tap offsets are < TM)
    w_ref    : (Cout, K^3*Cin) layer-summed weights, tap-major contraction (bf16)
    b_ref    : (Cout, 1)       layer-summed bias (f32)
    o_ref    : (1, Cout, TM)   lane-dense output tile
    xwide_ref: (Cin, 2*TM)     VMEM scratch: tile + halo, contiguous
    xcol_ref : (K^3*Cin, TM)   VMEM scratch: im2col buffer for this tile
    """
    # Stage tile + halo contiguously so every tap read is a static lane slice.
    xwide_ref[:, 0:TM] = xa_ref[0]
    xwide_ref[:, TM:2 * TM] = xb_ref[0]

    # im2col: each conv tap (kd,kh,kw) is a uniform lane shift in flat space;
    # each shifted slab is read from VMEM exactly once and stored once.
    for t in range(KT):
        kd, rem = divmod(t, K * K)
        kh, kw = divmod(rem, K)
        off = kd * H * W + kh * W + kw
        xcol_ref[t * Cin:(t + 1) * Cin, :] = xwide_ref[:, off:off + TM]

    # Single MXU matmul: bf16 operands, f32 accumulation, lane-dense result.
    acc = jnp.dot(w_ref[...], xcol_ref[...], preferred_element_type=jnp.float32)
    acc = acc + b_ref[...]                       # (Cout, 1) f32 broadcast
    o_ref[0] = acc.astype(o_ref.dtype)


def conv3d_rt_multi(x_ncdhw, weights, biases, kernel_size=3, tile_lanes=4096):
    """Pallas implementation of Conv3dRTMulti.forward (pad_tpye='valid', stride=1).

    x_ncdhw: (N, Cin, D, H, W)
    weights: (L, Cout, Cin, K, K, K)   per-layer PyTorch Conv3d weights
    biases : (L, Cout)
    returns: (N, Cout, D-K+1, H-K+1, W-K+1)
    """
    L, Cout, Cin, K = (weights.shape[0], weights.shape[1],
                       weights.shape[2], weights.shape[3])
    assert K == kernel_size
    N, _, D, H, W = x_ncdhw.shape
    Do, Ho, Wo = D - K + 1, H - K + 1, W - K + 1
    KT = K * K * K
    Kc = KT * Cin                                 # im2col contraction depth

    # ---- tiling ---------------------------------------------------------------
    Mout = Do * H * W                             # flat output length (full H,W rows)
    max_off = (K - 1) * (H * W + W + 1)           # largest tap lane shift
    TM = min(_round_up(Mout, 128), _round_up(tile_lanes, 128))
    TM = max(TM, _round_up(max_off, 128))         # halo tile must cover every tap
    Mout_p = _round_up(Mout, TM)
    J = Mout_p // TM                              # spatial tiles per batch element
    Mflat = D * H * W
    Mpad = (J + 1) * TM                           # +1 tile so the halo view of the
                                                  # last tile is in bounds (>= Mflat)

    # ---- layout-only glue (bf16 operands, f32 accumulation in-kernel) ----------
    x = x_ncdhw.reshape(N, Cin, Mflat).astype(jnp.bfloat16)
    x = jnp.pad(x, ((0, 0), (0, 0), (0, Mpad - Mflat)))
    w = jnp.sum(weights, axis=0)                                   # (Cout,Cin,K,K,K)
    w = jnp.transpose(w, (0, 2, 3, 4, 1)).reshape(Cout, Kc)        # tap-major rows
    w = w.astype(jnp.bfloat16)
    b = jnp.sum(biases, axis=0).astype(jnp.float32).reshape(Cout, 1)

    kern = functools.partial(_conv3d_multi_kernel, K=K, H=H, W=W, Cin=Cin,
                             TM=TM, KT=KT)

    out_itemsize = jnp.dtype(x_ncdhw.dtype).itemsize
    flops = 2 * N * J * Cout * Kc * TM
    bytes_accessed = (2 * N * Cin * Mpad * 2                 # x read via 2 views (bf16)
                      + Cout * Kc * 2 + Cout * 4             # weights + bias
                      + N * Cout * Mout_p * out_itemsize)    # output

    out_flat = pl.pallas_call(
        kern,
        out_shape=jax.ShapeDtypeStruct((N, Cout, Mout_p), x_ncdhw.dtype),
        grid_spec=pltpu.PrefetchScalarGridSpec(
            num_scalar_prefetch=0,
            grid=(N, J),
            in_specs=[
                pl.BlockSpec((1, Cin, TM), lambda n, j: (n, 0, j)),      # x tile
                pl.BlockSpec((1, Cin, TM), lambda n, j: (n, 0, j + 1)),  # halo tile
                pl.BlockSpec((Cout, Kc), lambda n, j: (0, 0)),           # summed W
                pl.BlockSpec((Cout, 1), lambda n, j: (0, 0)),            # summed b
            ],
            out_specs=pl.BlockSpec((1, Cout, TM), lambda n, j: (n, 0, j)),
            scratch_shapes=[
                pltpu.VMEM((Cin, 2 * TM), jnp.bfloat16),    # tile + halo staging
                pltpu.VMEM((Kc, TM), jnp.bfloat16),         # im2col buffer
            ],
        ),
        compiler_params=pltpu.CompilerParams(
            dimension_semantics=("parallel", "parallel"),
            vmem_limit_bytes=48 * 1024 * 1024),
        cost_estimate=pl.CostEstimate(flops=flops, transcendentals=0,
                                      bytes_accessed=bytes_accessed),
    )(x, x, w, b)

    # crop padded / garbage rows; already channels-first NCDHW
    out = out_flat[:, :, :Mout].reshape(N, Cout, Do, H, W)[:, :, :, :Ho, :Wo]
    return out


def conv3d_rt_multi_ref(x, weights, biases):
    """Pure-JAX reference matching the PyTorch forward."""
    res = 0
    for l in range(weights.shape[0]):
        res = res + lax.conv_general_dilated(
            x, weights[l], window_strides=(1, 1, 1), padding="VALID",
            dimension_numbers=("NCDHW", "OIDHW", "NCDHW"))
        res = res + biases[l][None, :, None, None, None]
    return res


if __name__ == "__main__":
    N, Cin, Cout, S, K = 2, 4, 8, 8, 3
    L = len(range(K, -1, -2))          # kernel_size=3 -> 2 layers (both kernel 3)

    key = jax.random.PRNGKey(0)
    kx, kw, kb = jax.random.split(key, 3)
    x = jax.random.normal(kx, (N, Cin, S, S, S), jnp.float32)

    # Conv3d-shaped params: weight (Cout, Cin, K, K, K), bias (Cout,)
    fan_in = Cin * K * K * K
    bound = 1.0 / (fan_in ** 0.5)
    weights = jax.random.uniform(kw, (L, Cout, Cin, K, K, K), jnp.float32,
                                 minval=-bound, maxval=bound)
    biases = jax.random.uniform(kb, (L, Cout), jnp.float32,
                                minval=-bound, maxval=bound)

    out = conv3d_rt_multi(x, weights, biases, kernel_size=K)
    out = jax.block_until_ready(out)

    ref = conv3d_rt_multi_ref(x, weights, biases)
    assert out.shape == ref.shape == (N, Cout, S - K + 1, S - K + 1, S - K + 1)
    err = float(jnp.max(jnp.abs(out - ref)))
    # bf16 operands with f32 accumulation over a 108-deep contraction
    assert err < 5e-2, f"max abs err {err}"
    print("KERNEL_OK")
</pallas_src>

<mosaic_0001>
module attributes {stable_mosaic.version = 11 : i64} {
  func.func @_conv3d_multi_kernel(%arg0: i32, %arg1: i32, %arg2: memref<1x4x384xbf16, #tpu.memory_space<vmem>>, %arg3: memref<1x4x384xbf16, #tpu.memory_space<vmem>>, %arg4: memref<8x108xbf16, #tpu.memory_space<vmem>>, %arg5: memref<8x1xf32, #tpu.memory_space<vmem>>, %arg6: memref<1x8x384xf32, #tpu.memory_space<vmem>>, %arg7: memref<4x768xbf16, #tpu.memory_space<vmem>>, %arg8: memref<108x384xbf16, #tpu.memory_space<vmem>>) attributes {dimension_semantics = [#tpu.dimension_semantics<parallel>, #tpu.dimension_semantics<parallel>], iteration_bounds = array<i64: 2, 1>, scalar_prefetch = 0 : i64, scratch_operands = 2 : i64, tpu.core_type = #tpu.core_type<tc>, window_params = [{transform_indices = @transform_0, window_bounds = array<i64: 1, 4, 384>}, {transform_indices = @transform_1, window_bounds = array<i64: 1, 4, 384>}, {pipeline_mode = #tpu.pipeline_mode<synchronous>, transform_indices = @transform_2, window_bounds = array<i64: 8, 108>}, {pipeline_mode = #tpu.pipeline_mode<synchronous>, transform_indices = @transform_3, window_bounds = array<i64: 8, 1>}, {transform_indices = @transform_4, window_bounds = array<i64: 1, 8, 384>}]} {
    %c0 = arith.constant 0 : index
    %c0_0 = arith.constant 0 : index
    %c0_1 = arith.constant 0 : index
    %0 = vector.load %arg2[%c0, %c0_0, %c0_1] : memref<1x4x384xbf16, #tpu.memory_space<vmem>>, vector<1x4x384xbf16>
    %1 = vector.shape_cast %0 : vector<1x4x384xbf16> to vector<4x384xbf16>
    %c0_2 = arith.constant 0 : index
    %c0_3 = arith.constant 0 : index
    %2 = vector.load %arg7[%c0_2, %c0_3] : memref<4x768xbf16, #tpu.memory_space<vmem>>, vector<4x384xbf16>
    tpu.vector_store %arg7[%c0_2, %c0_3], %1 {strides = array<i32>} : memref<4x768xbf16, #tpu.memory_space<vmem>>, vector<4x384xbf16>,
    %c0_4 = arith.constant 0 : index
    %c0_5 = arith.constant 0 : index
    %c0_6 = arith.constant 0 : index
    %3 = vector.load %arg3[%c0_4, %c0_5, %c0_6] : memref<1x4x384xbf16, #tpu.memory_space<vmem>>, vector<1x4x384xbf16>
    %4 = vector.shape_cast %3 : vector<1x4x384xbf16> to vector<4x384xbf16>
    %c0_7 = arith.constant 0 : index
    %c384 = arith.constant 384 : index
    %5 = vector.load %arg7[%c0_7, %c384] : memref<4x768xbf16, #tpu.memory_space<vmem>>, vector<4x384xbf16>
    tpu.vector_store %arg7[%c0_7, %c384], %4 {strides = array<i32>} : memref<4x768xbf16, #tpu.memory_space<vmem>>, vector<4x384xbf16>,
    %c0_8 = arith.constant 0 : index
    %c0_9 = arith.constant 0 : index
    %6 = vector.load %arg7[%c0_8, %c0_9] : memref<4x768xbf16, #tpu.memory_space<vmem>>, vector<4x384xbf16>
    %c0_10 = arith.constant 0 : index
    %c0_11 = arith.constant 0 : index
    %7 = vector.load %arg8[%c0_10, %c0_11] : memref<108x384xbf16, #tpu.memory_space<vmem>>, vector<4x384xbf16>
    tpu.vector_store %arg8[%c0_10, %c0_11], %6 {strides = array<i32>} : memref<108x384xbf16, #tpu.memory_space<vmem>>, vector<4x384xbf16>,
    %c0_12 = arith.constant 0 : index
    %c1 = arith.constant 1 : index
    %8 = vector.load %arg7[%c0_12, %c1] : memref<4x768xbf16, #tpu.memory_space<vmem>>, vector<4x384xbf16>
    %c4 = arith.constant 4 : index
    %c0_13 = arith.constant 0 : index
    %9 = vector.load %arg8[%c4, %c0_13] : memref<108x384xbf16, #tpu.memory_space<vmem>>, vector<4x384xbf16>
    tpu.vector_store %arg8[%c4, %c0_13], %8 {strides = array<i32>} : memref<108x384xbf16, #tpu.memory_space<vmem>>, vector<4x384xbf16>,
    %c0_14 = arith.constant 0 : index
    %c2 = arith.constant 2 : index
    %10 = vector.load %arg7[%c0_14, %c2] : memref<4x768xbf16, #tpu.memory_space<vmem>>, vector<4x384xbf16>
    %c8 = arith.constant 8 : index
    %c0_15 = arith.constant 0 : index
    %11 = vector.load %arg8[%c8, %c0_15] : memref<108x384xbf16, #tpu.memory_space<vmem>>, vector<4x384xbf16>
    tpu.vector_store %arg8[%c8, %c0_15], %10 {strides = array<i32>} : memref<108x384xbf16, #tpu.memory_space<vmem>>, vector<4x384xbf16>,
    %c0_16 = arith.constant 0 : index
    %c8_17 = arith.constant 8 : index
    %12 = vector.load %arg7[%c0_16, %c8_17] : memref<4x768xbf16, #tpu.memory_space<vmem>>, vector<4x384xbf16>
    %c12 = arith.constant 12 : index
    %c0_18 = arith.constant 0 : index
    %13 = vector.load %arg8[%c12, %c0_18] : memref<108x384xbf16, #tpu.memory_space<vmem>>, vector<4x384xbf16>
    tpu.vector_store %arg8[%c12, %c0_18], %12 {strides = array<i32>} : memref<108x384xbf16, #tpu.memory_space<vmem>>, vector<4x384xbf16>,
    %c0_19 = arith.constant 0 : index
    %c9 = arith.constant 9 : index
    %14 = vector.load %arg7[%c0_19, %c9] : memref<4x768xbf16, #tpu.memory_space<vmem>>, vector<4x384xbf16>
    %c16 = arith.constant 16 : index
    %c0_20 = arith.constant 0 : index
    %15 = vector.load %arg8[%c16, %c0_20] : memref<108x384xbf16, #tpu.memory_space<vmem>>, vector<4x384xbf16>
    tpu.vector_store %arg8[%c16, %c0_20], %14 {strides = array<i32>} : memref<108x384xbf16, #tpu.memory_space<vmem>>, vector<4x384xbf16>,
    %c0_21 = arith.constant 0 : index
    %c10 = arith.constant 10 : index
    %16 = vector.load %arg7[%c0_21, %c10] : memref<4x768xbf16, #tpu.memory_space<vmem>>, vector<4x384xbf16>
    %c20 = arith.constant 20 : index
    %c0_22 = arith.constant 0 : index
    %17 = vector.load %arg8[%c20, %c0_22] : memref<108x384xbf16, #tpu.memory_space<vmem>>, vector<4x384xbf16>
    tpu.vector_store %arg8[%c20, %c0_22], %16 {strides = array<i32>} : memref<108x384xbf16, #tpu.memory_space<vmem>>, vector<4x384xbf16>,
    %c0_23 = arith.constant 0 : index
    %c16_24 = arith.constant 16 : index
    %18 = vector.load %arg7[%c0_23, %c16_24] : memref<4x768xbf16, #tpu.memory_space<vmem>>, vector<4x384xbf16>
    %c24 = arith.constant 24 : index
    %c0_25 = arith.constant 0 : index
    %19 = vector.load %arg8[%c24, %c0_25] : memref<108x384xbf16, #tpu.memory_space<vmem>>, vector<4x384xbf16>
    tpu.vector_store %arg8[%c24, %c0_25], %18 {strides = array<i32>} : memref<108x384xbf16, #tpu.memory_space<vmem>>, vector<4x384xbf16>,
    %c0_26 = arith.constant 0 : index
    %c17 = arith.constant 17 : index
    %20 = vector.load %arg7[%c0_26, %c17] : memref<4x768xbf16, #tpu.memory_space<vmem>>, vector<4x384xbf16>
    %c28 = arith.constant 28 : index
    %c0_27 = arith.constant 0 : index
    %21 = vector.load %arg8[%c28, %c0_27] : memref<108x384xbf16, #tpu.memory_space<vmem>>, vector<4x384xbf16>
    tpu.vector_store %arg8[%c28, %c0_27], %20 {strides = array<i32>} : memref<108x384xbf16, #tpu.memory_space<vmem>>, vector<4x384xbf16>,
    %c0_28 = arith.constant 0 : index
    %c18 = arith.constant 18 : index
    %22 = vector.load %arg7[%c0_28, %c18] : memref<4x768xbf16, #tpu.memory_space<vmem>>, vector<4x384xbf16>
    %c32 = arith.constant 32 : index
    %c0_29 = arith.constant 0 : index
    %23 = vector.load %arg8[%c32, %c0_29] : memref<108x384xbf16, #tpu.memory_space<vmem>>, vector<4x384xbf16>
    tpu.vector_store %arg8[%c32, %c0_29], %22 {strides = array<i32>} : memref<108x384xbf16, #tpu.memory_space<vmem>>, vector<4x384xbf16>,
    %c0_30 = arith.constant 0 : index
    %c64 = arith.constant 64 : index
    %24 = vector.load %arg7[%c0_30, %c64] : memref<4x768xbf16, #tpu.memory_space<vmem>>, vector<4x384xbf16>
    %c36 = arith.constant 36 : index
    %c0_31 = arith.constant 0 : index
    %25 = vector.load %arg8[%c36, %c0_31] : memref<108x384xbf16, #tpu.memory_space<vmem>>, vector<4x384xbf16>
    tpu.vector_store %arg8[%c36, %c0_31], %24 {strides = array<i32>} : memref<108x384xbf16, #tpu.memory_space<vmem>>, vector<4x384xbf16>,
    %c0_32 = arith.constant 0 : index
    %c65 = arith.constant 65 : index
    %26 = vector.load %arg7[%c0_32, %c65] : memref<4x768xbf16, #tpu.memory_space<vmem>>, vector<4x384xbf16>
    %c40 = arith.constant 40 : index
    %c0_33 = arith.constant 0 : index
    %27 = vector.load %arg8[%c40, %c0_33] : memref<108x384xbf16, #tpu.memory_space<vmem>>, vector<4x384xbf16>
    tpu.vector_store %arg8[%c40, %c0_33], %26 {strides = array<i32>} : memref<108x384xbf16, #tpu.memory_space<vmem>>, vector<4x384xbf16>,
    %c0_34 = arith.constant 0 : index
    %c66 = arith.constant 66 : index
    %28 = vector.load %arg7[%c0_34, %c66] : memref<4x768xbf16, #tpu.memory_space<vmem>>, vector<4x384xbf16>
    %c44 = arith.constant 44 : index
    %c0_35 = arith.constant 0 : index
    %29 = vector.load %arg8[%c44, %c0_35] : memref<108x384xbf16, #tpu.memory_space<vmem>>, vector<4x384xbf16>
    tpu.vector_store %arg8[%c44, %c0_35], %28 {strides = array<i32>} : memref<108x384xbf16, #tpu.memory_space<vmem>>, vector<4x384xbf16>,
    %c0_36 = arith.constant 0 : index
    %c72 = arith.constant 72 : index
    %30 = vector.load %arg7[%c0_36, %c72] : memref<4x768xbf16, #tpu.memory_space<vmem>>, vector<4x384xbf16>
    %c48 = arith.constant 48 : index
    %c0_37 = arith.constant 0 : index
    %31 = vector.load %arg8[%c48, %c0_37] : memref<108x384xbf16, #tpu.memory_space<vmem>>, vector<4x384xbf16>
    tpu.vector_store %arg8[%c48, %c0_37], %30 {strides = array<i32>} : memref<108x384xbf16, #tpu.memory_space<vmem>>, vector<4x384xbf16>,
    %c0_38 = arith.constant 0 : index
    %c73 = arith.constant 73 : index
    %32 = vector.load %arg7[%c0_38, %c73] : memref<4x768xbf16, #tpu.memory_space<vmem>>, vector<4x384xbf16>
    %c52 = arith.constant 52 : index
    %c0_39 = arith.constant 0 : index
    %33 = vector.load %arg8[%c52, %c0_39] : memref<108x384xbf16, #tpu.memory_space<vmem>>, vector<4x384xbf16>
    tpu.vector_store %arg8[%c52, %c0_39], %32 {strides = array<i32>} : memref<108x384xbf16, #tpu.memory_space<vmem>>, vector<4x384xbf16>,
    %c0_40 = arith.constant 0 : index
    %c74 = arith.constant 74 : index
    %34 = vector.load %arg7[%c0_40, %c74] : memref<4x768xbf16, #tpu.memory_space<vmem>>, vector<4x384xbf16>
    %c56 = arith.constant 56 : index
    %c0_41 = arith.constant 0 : index
    %35 = vector.load %arg8[%c56, %c0_41] : memref<108x384xbf16, #tpu.memory_space<vmem>>, vector<4x384xbf16>
    tpu.vector_store %arg8[%c56, %c0_41], %34 {strides = array<i32>} : memref<108x384xbf16, #tpu.memory_space<vmem>>, vector<4x384xbf16>,
    %c0_42 = arith.constant 0 : index
    %c80 = arith.constant 80 : index
    %36 = vector.load %arg7[%c0_42, %c80] : memref<4x768xbf16, #tpu.memory_space<vmem>>, vector<4x384xbf16>
    %c60 = arith.constant 60 : index
    %c0_43 = arith.constant 0 : index
    %37 = vector.load %arg8[%c60, %c0_43] : memref<108x384xbf16, #tpu.memory_space<vmem>>, vector<4x384xbf16>
    tpu.vector_store %arg8[%c60, %c0_43], %36 {strides = array<i32>} : memref<108x384xbf16, #tpu.memory_space<vmem>>, vector<4x384xbf16>,
    %c0_44 = arith.constant 0 : index
    %c81 = arith.constant 81 : index
    %38 = vector.load %arg7[%c0_44, %c81] : memref<4x768xbf16, #tpu.memory_space<vmem>>, vector<4x384xbf16>
    %c64_45 = arith.constant 64 : index
    %c0_46 = arith.constant 0 : index
    %39 = vector.load %arg8[%c64_45, %c0_46] : memref<108x384xbf16, #tpu.memory_space<vmem>>, vector<4x384xbf16>
    tpu.vector_store %arg8[%c64_45, %c0_46], %38 {strides = array<i32>} : memref<108x384xbf16, #tpu.memory_space<vmem>>, vector<4x384xbf16>,
    %c0_47 = arith.constant 0 : index
    %c82 = arith.constant 82 : index
    %40 = vector.load %arg7[%c0_47, %c82] : memref<4x768xbf16, #tpu.memory_space<vmem>>, vector<4x384xbf16>
    %c68 = arith.constant 68 : index
    %c0_48 = arith.constant 0 : index
    %41 = vector.load %arg8[%c68, %c0_48] : memref<108x384xbf16, #tpu.memory_space<vmem>>, vector<4x384xbf16>
    tpu.vector_store %arg8[%c68, %c0_48], %40 {strides = array<i32>} : memref<108x384xbf16, #tpu.memory_space<vmem>>, vector<4x384xbf16>,
    %c0_49 = arith.constant 0 : index
    %c128 = arith.constant 128 : index
    %42 = vector.load %arg7[%c0_49, %c128] : memref<4x768xbf16, #tpu.memory_space<vmem>>, vector<4x384xbf16>
    %c72_50 = arith.constant 72 : index
    %c0_51 = arith.constant 0 : index
    %43 = vector.load %arg8[%c72_50, %c0_51] : memref<108x384xbf16, #tpu.memory_space<vmem>>, vector<4x384xbf16>
    tpu.vector_store %arg8[%c72_50, %c0_51], %42 {strides = array<i32>} : memref<108x384xbf16, #tpu.memory_space<vmem>>, vector<4x384xbf16>,
    %c0_52 = arith.constant 0 : index
    %c129 = arith.constant 129 : index
    %44 = vector.load %arg7[%c0_52, %c129] : memref<4x768xbf16, #tpu.memory_space<vmem>>, vector<4x384xbf16>
    %c76 = arith.constant 76 : index
    %c0_53 = arith.constant 0 : index
    %45 = vector.load %arg8[%c76, %c0_53] : memref<108x384xbf16, #tpu.memory_space<vmem>>, vector<4x384xbf16>
    tpu.vector_store %arg8[%c76, %c0_53], %44 {strides = array<i32>} : memref<108x384xbf16, #tpu.memory_space<vmem>>, vector<4x384xbf16>,
    %c0_54 = arith.constant 0 : index
    %c130 = arith.constant 130 : index
    %46 = vector.load %arg7[%c0_54, %c130] : memref<4x768xbf16, #tpu.memory_space<vmem>>, vector<4x384xbf16>
    %c80_55 = arith.constant 80 : index
    %c0_56 = arith.constant 0 : index
    %47 = vector.load %arg8[%c80_55, %c0_56] : memref<108x384xbf16, #tpu.memory_space<vmem>>, vector<4x384xbf16>
    tpu.vector_store %arg8[%c80_55, %c0_56], %46 {strides = array<i32>} : memref<108x384xbf16, #tpu.memory_space<vmem>>, vector<4x384xbf16>,
    %c0_57 = arith.constant 0 : index
    %c136 = arith.constant 136 : index
    %48 = vector.load %arg7[%c0_57, %c136] : memref<4x768xbf16, #tpu.memory_space<vmem>>, vector<4x384xbf16>
    %c84 = arith.constant 84 : index
    %c0_58 = arith.constant 0 : index
    %49 = vector.load %arg8[%c84, %c0_58] : memref<108x384xbf16, #tpu.memory_space<vmem>>, vector<4x384xbf16>
    tpu.vector_store %arg8[%c84, %c0_58], %48 {strides = array<i32>} : memref<108x384xbf16, #tpu.memory_space<vmem>>, vector<4x384xbf16>,
    %c0_59 = arith.constant 0 : index
    %c137 = arith.constant 137 : index
    %50 = vector.load %arg7[%c0_59, %c137] : memref<4x768xbf16, #tpu.memory_space<vmem>>, vector<4x384xbf16>
    %c88 = arith.constant 88 : index
    %c0_60 = arith.constant 0 : index
    %51 = vector.load %arg8[%c88, %c0_60] : memref<108x384xbf16, #tpu.memory_space<vmem>>, vector<4x384xbf16>
    tpu.vector_store %arg8[%c88, %c0_60], %50 {strides = array<i32>} : memref<108x384xbf16, #tpu.memory_space<vmem>>, vector<4x384xbf16>,
    %c0_61 = arith.constant 0 : index
    %c138 = arith.constant 138 : index
    %52 = vector.load %arg7[%c0_61, %c138] : memref<4x768xbf16, #tpu.memory_space<vmem>>, vector<4x384xbf16>
    %c92 = arith.constant 92 : index
    %c0_62 = arith.constant 0 : index
    %53 = vector.load %arg8[%c92, %c0_62] : memref<108x384xbf16, #tpu.memory_space<vmem>>, vector<4x384xbf16>
    tpu.vector_store %arg8[%c92, %c0_62], %52 {strides = array<i32>} : memref<108x384xbf16, #tpu.memory_space<vmem>>, vector<4x384xbf16>,
    %c0_63 = arith.constant 0 : index
    %c144 = arith.constant 144 : index
    %54 = vector.load %arg7[%c0_63, %c144] : memref<4x768xbf16, #tpu.memory_space<vmem>>, vector<4x384xbf16>
    %c96 = arith.constant 96 : index
    %c0_64 = arith.constant 0 : index
    %55 = vector.load %arg8[%c96, %c0_64] : memref<108x384xbf16, #tpu.memory_space<vmem>>, vector<4x384xbf16>
    tpu.vector_store %arg8[%c96, %c0_64], %54 {strides = array<i32>} : memref<108x384xbf16, #tpu.memory_space<vmem>>, vector<4x384xbf16>,
    %c0_65 = arith.constant 0 : index
    %c145 = arith.constant 145 : index
    %56 = vector.load %arg7[%c0_65, %c145] : memref<4x768xbf16, #tpu.memory_space<vmem>>, vector<4x384xbf16>
    %c100 = arith.constant 100 : index
    %c0_66 = arith.constant 0 : index
    %57 = vector.load %arg8[%c100, %c0_66] : memref<108x384xbf16, #tpu.memory_space<vmem>>, vector<4x384xbf16>
    tpu.vector_store %arg8[%c100, %c0_66], %56 {strides = array<i32>} : memref<108x384xbf16, #tpu.memory_space<vmem>>, vector<4x384xbf16>,
    %c0_67 = arith.constant 0 : index
    %c146 = arith.constant 146 : index
    %58 = vector.load %arg7[%c0_67, %c146] : memref<4x768xbf16, #tpu.memory_space<vmem>>, vector<4x384xbf16>
    %c104 = arith.constant 104 : index
    %c0_68 = arith.constant 0 : index
    %59 = vector.load %arg8[%c104, %c0_68] : memref<108x384xbf16, #tpu.memory_space<vmem>>, vector<4x384xbf16>
    tpu.vector_store %arg8[%c104, %c0_68], %58 {strides = array<i32>} : memref<108x384xbf16, #tpu.memory_space<vmem>>, vector<4x384xbf16>,
    %c0_69 = arith.constant 0 : index
    %c0_70 = arith.constant 0 : index
    %60 = vector.load %arg4[%c0_69, %c0_70] : memref<8x108xbf16, #tpu.memory_space<vmem>>, vector<8x108xbf16>
    %c0_71 = arith.constant 0 : index
    %c0_72 = arith.constant 0 : index
    %61 = vector.load %arg8[%c0_71, %c0_72] : memref<108x384xbf16, #tpu.memory_space<vmem>>, vector<108x384xbf16>
    %cst = arith.constant dense<0.000000e+00> : vector<8x384xf32>
    %62 = tpu.matmul %60, %61, %cst {dimension_numbers = #tpu.dot_dimension_numbers<[1], [0], [0], [1], [0, 0, 1, 1], [], []>} : vector<8x108xbf16>, vector<108x384xbf16>, vector<8x384xf32> -> vector<8x384xf32>
    %c0_73 = arith.constant 0 : index
    %c0_74 = arith.constant 0 : index
    %63 = vector.load %arg5[%c0_73, %c0_74] : memref<8x1xf32, #tpu.memory_space<vmem>>, vector<8x1xf32>
    %64 = vector.broadcast %63 : vector<8x1xf32> to vector<8x384xf32>
    %65 = arith.addf %62, %64 : vector<8x384xf32>
    %c0_75 = arith.constant 0 : index
    %c0_76 = arith.constant 0 : index
    %c0_77 = arith.constant 0 : index
    %66 = vector.load %arg6[%c0_75, %c0_76, %c0_77] : memref<1x8x384xf32, #tpu.memory_space<vmem>>, vector<1x8x384xf32>
    %67 = vector.shape_cast %66 : vector<1x8x384xf32> to vector<8x384xf32>
    %68 = vector.shape_cast %65 : vector<8x384xf32> to vector<1x8x384xf32>
    tpu.vector_store %arg6[%c0_75, %c0_76, %c0_77], %68 {strides = array<i32>} : memref<1x8x384xf32, #tpu.memory_space<vmem>>, vector<1x8x384xf32>,
    return
  }
  func.func @transform_0(%arg0: i32, %arg1: i32) -> (i32, i32, i32) {
    %c0_i32 = arith.constant 0 : i32
    %c0_i32_0 = arith.constant 0 : i32
    return %arg0, %c0_i32, %arg1 : i32, i32, i32
  }
  func.func @transform_1(%arg0: i32, %arg1: i32) -> (i32, i32, i32) {
    %c1_i32 = arith.constant 1 : i32
    %0 = arith.addi %arg1, %c1_i32 : i32
    %c0_i32 = arith.constant 0 : i32
    %c0_i32_0 = arith.constant 0 : i32
    return %arg0, %c0_i32, %0 : i32, i32, i32
  }
  func.func @transform_2(%arg0: i32, %arg1: i32) -> (i32, i32) {
    %c0_i32 = arith.constant 0 : i32
    %c0_i32_0 = arith.constant 0 : i32
    %c0_i32_1 = arith.constant 0 : i32
    return %c0_i32, %c0_i32_0 : i32, i32
  }
  func.func @transform_3(%arg0: i32, %arg1: i32) -> (i32, i32) {
    %c0_i32 = arith.constant 0 : i32
    %c0_i32_0 = arith.constant 0 : i32
    %c0_i32_1 = arith.constant 0 : i32
    return %c0_i32, %c0_i32_0 : i32, i32
  }
  func.func @transform_4(%arg0: i32, %arg1: i32) -> (i32, i32, i32) {
    %c0_i32 = arith.constant 0 : i32
    %c0_i32_0 = arith.constant 0 : i32
    return %arg0, %c0_i32, %arg1 : i32, i32, i32
  }
}

</mosaic_0001>

<bundles_post_ra>
// kernel: tpu_custom_call.1
= control target key start
LH: loop header
LB: loop body
LE: loop exit
PB: predicated region body
PF: predicated region fallthrough
CT: control target
= control target key end

     0   :  { %9 = vsyncpa [#allocation5], 0  ;;  %s2205_s0 = inlined_call_operand.hbm [shape: bf16[2,4,768], index: 0, kind: input, shape index: {}]   ;;  %s2206_s1 = inlined_call_operand.hbm [shape: bf16[2,4,768], index: 1, kind: input, shape index: {}]   ;;  %s2207_s2 = inlined_call_operand.vmem [shape: bf16[8,108], index: 2, kind: input, shape index: {}]   ;;  %s2208_s3 = inlined_call_operand.vmem [shape: f32[8,1], index: 3, kind: input, shape index: {}]   ;;  %s2209_s4 = inlined_call_operand.hbm [shape: f32[2,8,384], index: 4, kind: output, shape index: {}]  }
   0x1   :  { %11 = vsyncpa [#allocation5 + $0x1], 0 }
   0x2   :  { %12 = vsyncpa [#allocation8], 0 }
   0x3   :  { %14 = vsyncpa [#allocation8 + $0x1], 0 }
   0x4   :  { %15 = vsyncpa [#allocation6], 0 }
   0x5   :  { %17 = vsyncpa [#allocation6 + $0x1], 0  ;;  %s1857_s15 = smov 0   ;;  %s1859_s16 = smov 0  }
   0x6   :  { %s1861_s17 = smov 0   ;;  %s1863_s18 = smov 0  }
   0x7   :  { %s1865_s19 = smov 0   ;;  %s1867_s20 = smov 0  }
   0x8 LB: > { %s1466_s21 = sadd.s32 4294967295, %s1806_s20   ;;  %s1467_s22 = sadd.s32 4294967294, %s1806_s20   ;;  %s1806_s20 = sphi %s1867_s20, %s23_s20   ;;  %s1802_s19 = sphi %s1865_s19, %s2228_s19   ;;  %s1798_s18 = sphi %s1863_s18, %s2227_s18   ;;  %s1794_s17 = sphi %s1861_s17, %s2226_s17   ;;  %s1790_s16 = sphi %s1859_s16, %s2225_s16   ;;  %s1786_s15 = sphi %s1857_s15, %s2224_s15  }
   0x9   : > { %s35_s23 = sadd.s32 1, %s1802_s19  ;;  %s44_s24 = sadd.s32 1, %s1794_s17 }
   0xa   : > { %p37_p0 = scmp.ge.s32.totalorder %s35_s23, 2  ;;  %p51_p1 = scmp.ne.s32.totalorder %s1794_s17, %s1790_s16 }
   0xb   : > { %p52_p2 = scmp.eq.s32.totalorder %s1806_s20, 0  ;;  %p57_p3 = scmp.ne.s32.totalorder %s1790_s16, %s1786_s15 }
   0xc   : > { %s2230_s23 = smov (%p37_p0, %s35_s23), 0  ;;  %p58_p5 = scmp.eq.s32.totalorder %s1466_s21, 0 }
   0xd   : > { %p1898_p4 = por %p52_p2, %p51_p1  ;;  %s39_s26 = ssub.s32 %s1802_s19, %s2230_s23 }
   0xe   : > { %p155_p6 = scmp.eq.s32.totalorder %s1466_s21, 1  ;;  %p42_p7 = scmp.eq.s32.totalorder %s39_s26, 0 }
   0xf   : > { %p1904_p8 = por %p58_p5, %p57_p3  ;;  %p161_p10 = scmp.eq.s32.totalorder %s1467_s22, 1 }
  0x10   : > { %p1908_p9 = por %p155_p6, %p51_p1  ;;  %p1553_p13 = scmp.lt.s32.totalorder %s1806_s20, 2 }
  0x11   : > { %s2213_s27 = scalar_select %p1904_p8, 1, 0 }
  0x12   : > { %s2214_s28 = scalar_select %p1908_p9, 1, 0 }
  0x13   : > { %s1913_s29 = scalar_select %p42_p7, %s1794_s17, %s44_s24  }
  0x14   : > { %p1915_p11 = por %p161_p10, %p57_p3  ;;  %s1922_s5 = sand.u32 1, %s1794_s17  }
  0x15   : > { %s1530_s6 = smul.u32 6, %s1922_s5  ;;  %p1928_p0 = pnand %p1553_p13, %p1898_p4 }
  0x16   : > { %s2215_s30 = scalar_select %p1915_p11, 1, 0 }
  0x17   : > { %s1531_s7 = smul.u32 192, %s1802_s19  ;;  %s191_s12 = scalar_lea.vmem [#allocation4], %s1530_s6 }
  0x18   : > { %s201_s13 = sshll.u32 %s191_s12, 4  ;;  %s188_s14 = scalar_lea.sflag [#allocation5], %s1922_s5  ;;  %s1942_s13 = int_to_ptr.vmem [resolvable:$true] %s201_s13 }
  0x19   : > { %s1938_s11 = scalar_lea.hbm %s2205_s0, %s1531_s7  ;;  %p1661_p3 = pneg %p1928_p0 }
  0x1a   : > { %s1659_s21 = scalar_lea.hbm %s1938_s11, 96  ;;  %s1664_s25 = scalar_lea.hbm %s2205_s0, 384 }
  0x1b   : > { %p1660_p2 = scmp.ne.s32.totalorder %s1938_s11, %s1659_s21  ;;  %p1665_p6 = scmp.lt.u32.totalorder %s1938_s11, %s2205_s0 }
  0x1c   : > { %p1666_p7 = scmp.lt.u32.totalorder %s1664_s25, %s1659_s21  ;;  %p1668_p13 = scmp.lt.u32.totalorder %s1659_s21, %s1938_s11 }
  0x1d   : > { %p1662_p4 = pnand %p1661_p3, %p1660_p2 }
  0x1e   : > { %p1667_p10 = por %p1666_p7, %p1665_p6 }
  0x1f   : > { %p1663_p5 = pneg %p1662_p4 }
  0x20   : > { %p1669_p12 = por %p1668_p13, %p1667_p10 }
  0x22   : > { %p1670_p1 = pnand %p1669_p12, %p1663_p5 }
  0x24   : > { %1673 = shalt.err (!%p1670_p1)
}
  0x25   : > { %s1674_s10 = scalar_lea.vmem %s1942_s13, 96  ;;  %s1808_s12 = smov [#allocation4]  }
  0x26   : > { %p1675_p2 = scmp.ne.s32.totalorder %s1942_s13, %s1674_s10  ;;  %s1679_s22 = sshll.u32 %s1808_s12, 4  ;;  %s1680_s22 = int_to_ptr.vmem [resolvable:$false] %s1679_s22 }
  0x27   : > { %s1681_s24 = scalar_lea.vmem %s1680_s22, 192  ;;  %p1682_p9 = scmp.lt.s32.totalorder %s1942_s13, %s1680_s22 }
  0x28   : > { %p1677_p4 = pnand %p1675_p2, %p1661_p3  ;;  %p1683_p6 = scmp.lt.s32.totalorder %s1681_s24, %s1674_s10 }
  0x2a   : > { %p1678_p11 = pneg %p1677_p4  ;;  %p1684_p7 = por %p1683_p6, %p1682_p9 }
  0x2c   : > { %p1685_p10 = pnand %p1684_p7, %p1678_p11 }
  0x2e   : > { %1688 = shalt.err (!%p1685_p10)
}
  0x2f   : > { %1545 = dma.hbm_to_vmem [thread:$0]  (!%p1928_p0), %s1938_s11, 96, %s1942_s13, %s188_s14  }
  0x30   : > { %p228_p12 = scmp.lt.s32.totalorder %s1806_s20, 3  ;;  %s1397_s26 = scalar_lea.hbm %s2206_s1, %s1531_s7 }
  0x31   : > { %p2217_p9 = scmp.ge.s32.totalorder %s1806_s20, 1  ;;  %s1982_s10 = scalar_lea.hbm %s1397_s26, 96 }
  0x32   : > { %s212_s12 = scalar_lea.vmem [#allocation7], %s1530_s6  ;;  %s209_s11 = scalar_lea.sflag [#allocation8], %s1922_s5 }
  0x33   : > { %p1978_p11 = pnand %p2217_p9, %p228_p12  ;;  %s223_s22 = sshll.u32 %s212_s12, 4  ;;  %s224_s22 = int_to_ptr.vmem [resolvable:$true] %s223_s22 }
  0x34   : > { %s1719_s13 = scalar_lea.hbm %s1397_s26, 192  ;;  %s1694_s24 = scalar_lea.hbm %s2206_s1, 384 }
  0x35   : > { %s2218_s9 = scalar_select %p1978_p11, 1, 0 }
  0x36   : > { %p1690_p1 = scmp.ne.s32.totalorder %s1982_s10, %s1719_s13  ;;  %p1695_p2 = scmp.lt.u32.totalorder %s1982_s10, %s2206_s1 }
  0x37   : > { %p1696_p4 = scmp.lt.u32.totalorder %s1694_s24, %s1719_s13  ;;  %p1698_p7 = scmp.lt.u32.totalorder %s1719_s13, %s1982_s10 }
  0x38   : > { %p1692_p5 = pnand %p1690_p1, %p1661_p3 }
  0x39   : > { %p1697_p6 = por %p1696_p4, %p1695_p2 }
  0x3a   : > { %p1693_p13 = pneg %p1692_p5 }
  0x3b   : > { %p1699_p10 = por %p1698_p7, %p1697_p6 }
  0x3d   : > { %p1700_p12 = pnand %p1699_p10, %p1693_p13 }
  0x3f   : > { %1703 = shalt.err (!%p1700_p12)
}
  0x40   : > { %s1704_s5 = scalar_lea.vmem %s224_s22, 96  ;;  %s1809_s6 = smov [#allocation7]  }
  0x41   : > { %p1705_p9 = scmp.ne.s32.totalorder %s224_s22, %s1704_s5  ;;  %s1709_s26 = sshll.u32 %s1809_s6, 4  ;;  %s1710_s26 = int_to_ptr.vmem [resolvable:$false] %s1709_s26 }
  0x42   : > { %s1711_s12 = scalar_lea.vmem %s1710_s26, 192  ;;  %p1712_p8 = scmp.lt.s32.totalorder %s224_s22, %s1710_s26 }
  0x43   : > { %p1707_p1 = pnand %p1705_p9, %p1661_p3  ;;  %p1713_p11 = scmp.lt.s32.totalorder %s1711_s12, %s1704_s5 }
  0x45   : > { %p1708_p5 = pneg %p1707_p1  ;;  %p1714_p2 = por %p1713_p11, %p1712_p8 }
  0x47   : > { %p1715_p4 = pnand %p1714_p2, %p1708_p5 }
  0x49   : > { %1718 = shalt.err (!%p1715_p4)
}
  0x4a   : > { %1548 = dma.hbm_to_vmem [thread:$0]  (!%p1928_p0), %s1982_s10, 96, %s224_s22, %s209_s11  }
  0x4b   : > { %p2219_p13 = scmp.ne.s32.totalorder %s2218_s9, 0 }
  0x4c   : > { %s2008_s13 = sand.u32 (!%p2219_p13), 1, %s1790_s16   ;;  %p2220_p3 = scmp.ne.s32.totalorder (!%p2219_p13), %s2213_s27, 0 }
  0x4d   : > { %232 = sbr.rel (%p2219_p13) target bundleno = 556 (0x22c), region = 36  ;;  %s235_s14 = scalar_lea.sflag (!%p2219_p13), [#allocation5], %s2008_s13 }
  0x4e   : > { %s1533_s7 = smul.u32 (!%p2219_p13), 6, %s2008_s13 }
  0x50   : > { %s238_s24 = scalar_lea.vmem (!%p2219_p13), [#allocation4], %s1533_s7 }
  0x54   : > { %1773 = dma.done.wait (%p2220_p3), %s235_s14, 96  }
  0x55   : > { %1775 = vsyncadd (%p2220_p3), %s235_s14, 4294967200  ;;  %s244_s8 = scalar_lea.sflag [#allocation8], %s2008_s13  ;;  %s247_s10 = scalar_lea.vmem [#allocation7], %s1533_s7 }
  0x56   : > { %1777 = dma.done.wait (%p2220_p3), %s244_s8, 96  }
  0x57   : > { %1779 = vsyncadd (%p2220_p3), %s244_s8, 4294967200  ;;  %v1810_v0 = vmov 1983009808   ;;  %v313_v2 = vlaneseq  ;;  %v282_v3 = vld [vmem:[%s238_s24] sm:$0x3f]  ;;  %s1811_s9 = smov 126  }
  0x58   : > { %v311_v1 = vunpack.c.l.s4 %v1810_v0  ;;  %v284_v4 = vld [vmem:[%s247_s10] sm:$0x3f]  ;;  %283 = vst [vmem:[#allocation2] sm:$0x3f] %v282_v3  ;;  %s1812_s27 = smov 127   ;;  %s1813_s22 = smov 120  }
  0x59   : > { %285 = vst [vmem:[#allocation2 + $0x6] sm:$0x3f] %v284_v4  ;;  %v314_v6 = vshrl.u32 %v313_v2, 7  ;;  %s1814_s11 = smov 119   ;;  %s1815_s21 = smov 118   ;;  %v1817_v16 = vmov 0.0  }
  0x5a   : > { %v312_v5 = vunpack.c.0.s8 %v311_v1  ;;  %s1816_s25 = smov 112   ;;  %1512 = vmatprep.subr.bf16.mxu1 %v1817_v16  ;;  %s1818_s5 = smov 111   ;;  %vm1829_vm0 = vmmov 0   ;;  %v1830_v25 = vmov 0   ;;  %v1125_v26 = vld [vmem:[%s2208_s3] sm:$0xff]  ;;  %vm332_vm1 = vcmask 1039360  }
  0x5b   : > { %s1819_s6 = smov 110   ;;  %s1820_s26 = smov 64   ;;  %1526 = vmatprep.mubr.msk.bf16.mxu1 %vm1829_vm0, %v1817_v16  ;;  %1286 = vmatprep.mubr.bf16.mxu0 %v1830_v25  ;;  %vm394_vm2 = vcmask 982016   ;;  %vm456_vm3 = vcmask 965632   ;;  %vm330_vm4 = vcmask 1043456   ;;  %vm363_vm5 = vcmask 1031168  }
  0x5c   : > { %v2021_v7 = vsub.s32 %v312_v5, %v314_v6  ;;  %s1821_s12 = smov 63   ;;  %s1822_s7 = smov 62   ;;  %1624 = vset.pattern.permute.xlu0 %v1830_v25  ;;  %vm425_vm6 = vcmask 973824   ;;  %vm487_vm7 = vcmask 916480   ;;  %vm518_vm8 = vcmask 908288  }
  0x5d   : > { %s1823_s14 = smov 56   ;;  %s1824_s24 = smov 55   ;;  %vm549_vm9 = vcmask 900096   ;;  %vm580_vm10 = vcmask 523264   ;;  %vm611_vm11 = vcmask 515072   ;;  %vm642_vm12 = vcmask 506880  }
  0x5e   : > { %s1825_s8 = smov 54   ;;  %s1826_s10 = smov 48   ;;  %vm673_vm13 = vcmask 457728   ;;  %vm704_vm14 = vcmask 449536   ;;  %vm735_vm15 = vcmask 441344   ;;  %vm766_vm0 = vcmask 392192  }
  0x5f   : > { %v286_v9 = vld [vmem:[#allocation2] sm:$0x3f]  ;;  %p2221_p0 = scmp.ne.s32.totalorder %s2214_s28, 0 }
  0x60   : > { %v339_v8 = vld [vmem:[#allocation2] sm:$0xff]  ;;  %1473 = vst.sshfl [vmem:[#allocation3] sm:$0xf pattern:$0x76325410] %v286_v9  ;;  %v288_v11 = vcombine.high %v286_v9, %v286_v9 }
  0x61   : > { %v2024_v10 = vrot.slane %v339_v8, %v2021_v7  ;;  %v341_v12 = vcombine.high %v339_v8, %v339_v8  ;;  %v309_v13 = vcombine.low %v339_v8, %v339_v8  ;;  %v835_v17 = vld [vmem:[#allocation2 + $0x2] sm:$0x3f] }
  0x62   : > { %1474 = vst.sshfl [vmem:[#allocation3 + $0x8] sm:$0x3 pattern:$0x76325410] %v288_v11  ;;  %v837_v18 = vcombine.high %v835_v17, %v835_v17  ;;  %v856_v19 = vld [vmem:[#allocation2 + $0x2] sm:$0xff] }
  0x63   : > { %356 = vrot.lane.b32.xlu1 %v2024_v10, %s1811_s9  ;;  %326 = vrot.lane.b32.xlu0 %v2024_v10, %s1812_s27  ;;  %v355_v14 = vrot.slane %v341_v12, %v2021_v7  ;;  %v316_v15 = vrot.slane %v309_v13, %v2021_v7  ;;  %1475 = vst.sshfl [vmem:[#allocation3 + $0x6c] sm:$0xf pattern:$0x76325410] %v835_v17 }
  0x64   : > { %1476 = vst.sshfl [vmem:[#allocation3 + $0x74] sm:$0x3 pattern:$0x76325410] %v837_v18  ;;  %v858_v20 = vcombine.low %v856_v19, %v856_v19  ;;  %v872_v21 = vrot.slane %v856_v19, %v2021_v7  ;;  %v888_v23 = vcombine.high %v856_v19, %v856_v19 }
  0x66   : > { %v865_v22 = vrot.slane %v858_v20, %v2021_v7  ;;  %v902_v24 = vrot.slane %v888_v23, %v2021_v7 }
  0x67   : > { %389 = vrot.lane.b32.xlu1 %v2024_v10, %s1813_s22  ;;  %418 = vrot.lane.b32.xlu0 %v2024_v10, %s1814_s11 }
  0x6b   : > { %451 = vrot.lane.b32.xlu1 %v2024_v10, %s1815_s21  ;;  %480 = vrot.lane.b32.xlu0 %v2024_v10, %s1816_s25 }
  0x6f   : > { %358 = vrot.lane.b32.xlu1 %v355_v14, %s1811_s9  ;;  %324 = vrot.lane.b32.xlu0 %v316_v15, %s1812_s27 }
  0x73   : > { %420 = vrot.lane.b32.xlu1 %v355_v14, %s1814_s11  ;;  %387 = vrot.lane.b32.xlu0 %v316_v15, %s1813_s22 }
  0x77   : > { %482 = vrot.lane.b32.xlu1 %v355_v14, %s1816_s25  ;;  %449 = vrot.lane.b32.xlu0 %v316_v15, %s1815_s21 }
  0x7b   : > { %513 = vrot.lane.b32.xlu1 %v2024_v10, %s1818_s5  ;;  %511 = vrot.lane.b32.xlu0 %v316_v15, %s1818_s5 }
  0x7f   : > { %544 = vrot.lane.b32.xlu1 %v355_v14, %s1819_s6  ;;  %542 = vrot.lane.b32.xlu0 %v2024_v10, %s1819_s6 }
  0x83   : > { %575 = vrot.lane.b32.xlu1 %v2024_v10, %s1820_s26  ;;  %573 = vrot.lane.b32.xlu0 %v316_v15, %s1820_s26  ;;  %s1827_s26 = smov 47  }
  0x87   : > { %606 = vrot.lane.b32.xlu1 %v355_v14, %s1821_s12  ;;  %604 = vrot.lane.b32.xlu0 %v2024_v10, %s1821_s12  ;;  %s1828_s12 = smov 46  }
  0x8b   : > { %637 = vrot.lane.b32.xlu1 %v2024_v10, %s1822_s7  ;;  %635 = vrot.lane.b32.xlu0 %v316_v15, %s1822_s7 }
  0x8f   : > { %668 = vrot.lane.b32.xlu1 %v355_v14, %s1823_s14  ;;  %666 = vrot.lane.b32.xlu0 %v2024_v10, %s1823_s14 }
  0x93   : > { %699 = vrot.lane.b32.xlu1 %v2024_v10, %s1824_s24  ;;  %697 = vrot.lane.b32.xlu0 %v316_v15, %s1824_s24 }
  0x97   : > { %730 = vrot.lane.b32.xlu1 %v355_v14, %s1825_s8  ;;  %728 = vrot.lane.b32.xlu0 %v2024_v10, %s1825_s8 }
  0x9b   : > { %761 = vrot.lane.b32.xlu1 %v2024_v10, %s1826_s10  ;;  %759 = vrot.lane.b32.xlu0 %v316_v15, %s1826_s10  ;;  %s1831_s10 = smov [#allocation9]  }
  0x9f   : > { %792 = vrot.lane.b32.xlu1 %v355_v14, %s1827_s26  ;;  %790 = vrot.lane.b32.xlu0 %v2024_v10, %s1827_s26  ;;  %s1724_s26 = sshll.u32 %s1831_s10, 4  ;;  %s1725_s26 = int_to_ptr.vmem [resolvable:$false] %s1724_s26 }
  0xa3   : > { %823 = vrot.lane.b32.xlu1 %v2024_v10, %s1828_s12  ;;  %821 = vrot.lane.b32.xlu0 %v316_v15, %s1828_s12  ;;  %s1726_s12 = scalar_lea.vmem %s1725_s26, 768 }
  0xa7   : > { %875 = vrot.lane.b32.xlu1 %v872_v21, %s1812_s27  ;;  %873 = vrot.lane.b32.xlu0 %v865_v22, %s1812_s27 }
  0xab   : > { %905 = vrot.lane.b32.xlu1 %v902_v24, %s1811_s9  ;;  %903 = vrot.lane.b32.xlu0 %v872_v21, %s1811_s9 }
  0xaf   : > { %935 = vrot.lane.b32.xlu1 %v872_v21, %s1813_s22  ;;  %933 = vrot.lane.b32.xlu0 %v865_v22, %s1813_s22 }
  0xb3   : > { %965 = vrot.lane.b32.xlu1 %v902_v24, %s1814_s11  ;;  %963 = vrot.lane.b32.xlu0 %v872_v21, %s1814_s11 }
  0xb7   : > { %995 = vrot.lane.b32.xlu1 %v872_v21, %s1815_s21  ;;  %993 = vrot.lane.b32.xlu0 %v865_v22, %s1815_s21  ;;  %s1534_s21 = smul.u32 24, %s2008_s13 }
  0xbb   : > { %1025 = vrot.lane.b32.xlu1 %v902_v24, %s1816_s25  ;;  %1023 = vrot.lane.b32.xlu0 %v872_v21, %s1816_s25  ;;  %s1535_s25 = smul.u32 384, %s1798_s18  ;;  %s1339_s18 = scalar_lea.sflag [#allocation6], %s2008_s13 }
  0xbd   : > { %s2156_s24 = scalar_lea.hbm %s2209_s4, %s1535_s25 }
  0xbf   : > { %1055 = vrot.lane.b32.xlu1 %v872_v21, %s1818_s5  ;;  %1053 = vrot.lane.b32.xlu0 %v865_v22, %s1818_s5  ;;  %s276_s5 = scalar_lea.vmem [#allocation9], %s1534_s21 }
  0xc3   : > { %1085 = vrot.lane.b32.xlu1 %v902_v24, %s1819_s6  ;;  %1083 = vrot.lane.b32.xlu0 %v872_v21, %s1819_s6  ;;  %s1355_s6 = sshll.u32 %s276_s5, 4  ;;  %s2158_s6 = int_to_ptr.vmem [resolvable:$true] %s1355_s6 }
  0xc4   : > { %s1720_s8 = scalar_lea.vmem %s2158_s6, 384  ;;  %p1727_p7 = scmp.lt.s32.totalorder %s2158_s6, %s1725_s26 }
  0xc5   : > { %p1721_p8 = scmp.ne.s32.totalorder %s2158_s6, %s1720_s8  ;;  %p1728_p10 = scmp.lt.s32.totalorder %s1726_s12, %s1720_s8 }
  0xc7   : > { %1128 = vperm.xlu0 %1624, %v1125_v26   ;;  %p1722_p11 = pnand %p1721_p8, %p2221_p0  ;;  %p1729_p12 = por %p1728_p10, %p1727_p7 }
  0xc9   : > { %p1723_p6 = pneg %p1722_p11 }
  0xcb   : > { %p1730_p9 = pnand %p1729_p12, %p1723_p6 }
  0xd5   : > { %v357_v27 = vpop.permute.xlu1 %356  ;;  %v327_v28 = vpop.permute.xlu0 %326 }
  0xd6   : > { %v329_v29 = vrot.slane %v327_v28, 4  ;;  %v360_v41 = vrot.slane %v357_v27, 4 }
  0xd8   : > { %v334_v30 = vsel %vm332_vm1, %v327_v28, %v329_v29 }
  0xd9   : > { %338 = vst [vmem:[#allocation3 + $0x8] sm:$0xc] %v334_v30  ;;  %v390_v31 = vpop.permute.xlu1 %389  ;;  %v419_v32 = vpop.permute.xlu0 %418 }
  0xda   : > { %v392_v33 = vrot.slane %v390_v31, 4  ;;  %v422_v51 = vrot.slane %v419_v32, 4 }
  0xdc   : > { %v396_v34 = vsel %vm394_vm2, %v390_v31, %v392_v33 }
  0xdd   : > { %400 = vst [vmem:[#allocation3 + $0x14] sm:$0xc] %v396_v34  ;;  %v452_v35 = vpop.permute.xlu1 %451  ;;  %v481_v36 = vpop.permute.xlu0 %480 }
  0xde   : > { %v454_v37 = vrot.slane %v452_v35, 4  ;;  %v484_v61 = vrot.slane %v481_v36, 4 }
  0xe0   : > { %v458_v38 = vsel %vm456_vm3, %v452_v35, %v454_v37 }
  0xe1   : > { %462 = vst [vmem:[#allocation3 + $0x20] sm:$0xc] %v458_v38  ;;  %v359_v39 = vpop.permute.xlu1 %358  ;;  %v325_v40 = vpop.permute.xlu0 %324 }
  0xe2   : > { %v361_v42 = vrot.slane %v359_v39, 4  ;;  %v328_v43 = vrot.slane %v325_v40, 4 }
  0xe4   : > { %v362_v44 = vsel %vm330_vm4, %v360_v41, %v361_v42  ;;  %v365_v45 = vsel %vm363_vm5, %v359_v39, %v361_v42  ;;  %v331_v46 = vsel %vm330_vm4, %v328_v43, %v329_v29 }
  0xe5   : > { %v364_v47 = vsel %vm363_vm5, %v357_v27, %v362_v44  ;;  %369 = vst [vmem:[#allocation3 + $0x14] sm:$0x3] %v365_v45  ;;  %v333_v48 = vsel %vm332_vm1, %v325_v40, %v331_v46  ;;  %v421_v49 = vpop.permute.xlu1 %420  ;;  %v388_v50 = vpop.permute.xlu0 %387 }
  0xe6   : > { %368 = vst [vmem:[#allocation3 + $0xc] sm:$0x33] %v364_v47  ;;  %337 = vst [vmem:[#allocation3] sm:$0xcc] %v333_v48  ;;  %v423_v52 = vrot.slane %v421_v49, 4  ;;  %v391_v53 = vrot.slane %v388_v50, 4 }
  0xe8   : > { %v424_v54 = vsel %vm330_vm4, %v422_v51, %v423_v52  ;;  %v427_v55 = vsel %vm425_vm6, %v421_v49, %v423_v52  ;;  %v393_v56 = vsel %vm330_vm4, %v391_v53, %v392_v33 }
  0xe9   : > { %v426_v57 = vsel %vm425_vm6, %v419_v32, %v424_v54  ;;  %431 = vst [vmem:[#allocation3 + $0x20] sm:$0x3] %v427_v55  ;;  %v395_v58 = vsel %vm394_vm2, %v388_v50, %v393_v56  ;;  %v483_v59 = vpop.permute.xlu1 %482  ;;  %v450_v60 = vpop.permute.xlu0 %449 }
  0xea   : > { %430 = vst [vmem:[#allocation3 + $0x18] sm:$0x33] %v426_v57  ;;  %399 = vst [vmem:[#allocation3 + $0xc] sm:$0xcc] %v395_v58  ;;  %v485_v62 = vrot.slane %v483_v59, 4  ;;  %v453_v63 = vrot.slane %v450_v60, 4 }
  0xec   : > { %v486_v0 = vsel %vm330_vm4, %v484_v61, %v485_v62  ;;  %v489_v1 = vsel %vm487_vm7, %v483_v59, %v485_v62  ;;  %v455_v2 = vsel %vm330_vm4, %v453_v63, %v454_v37  ;;  %v1630_v3 = vld [vmem:[#allocation3 + $0x8] ss:$12 sps:$4 sm:$0xff]  }
  0xed   : > { %v488_v4 = vsel %vm487_vm7, %v481_v36, %v486_v0  ;;  %493 = vst [vmem:[#allocation3 + $0x2c] sm:$0x3] %v489_v1  ;;  %v457_v5 = vsel %vm456_vm3, %v450_v60, %v455_v2  ;;  %v514_v6 = vpop.permute.xlu1 %513  ;;  %v512_v7 = vpop.permute.xlu0 %511  ;;  %1513 = vmatpush3.bf16.msra.mxu1 %v1630_v3 }
  0xee   : > { %492 = vst [vmem:[#allocation3 + $0x24] sm:$0x33] %v488_v4  ;;  %461 = vst [vmem:[#allocation3 + $0x18] sm:$0xcc] %v457_v5  ;;  %v516_v8 = vrot.slane %v514_v6, 4  ;;  %v515_v9 = vrot.slane %v512_v7, 4  ;;  %1514 = vmatprep.subr.bf16.mxu1 %v1817_v16 }
  0xf0   : > { %v520_v10 = vsel %vm518_vm8, %v514_v6, %v516_v8  ;;  %v517_v11 = vsel %vm330_vm4, %v515_v9, %v516_v8 }
  0xf1   : > { %524 = vst [vmem:[#allocation3 + $0x2c] sm:$0xc] %v520_v10  ;;  %v519_v12 = vsel %vm518_vm8, %v512_v7, %v517_v11  ;;  %v545_v13 = vpop.permute.xlu1 %544  ;;  %v543_v14 = vpop.permute.xlu0 %542  ;;  %v1631_v15 = vld [vmem:[#allocation3 + $0x4] ss:$12 sps:$4 sm:$0xff]   ;;  %v1633_v17 = vld [vmem:[#allocation3] ss:$12 sps:$4 sm:$0xff]  }
  0xf2   : > { %523 = vst [vmem:[#allocation3 + $0x24] sm:$0xcc] %v519_v12  ;;  %v547_v18 = vrot.slane %v545_v13, 4  ;;  %v546_v19 = vrot.slane %v543_v14, 4  ;;  %1254 = vmatprep.subr.bf16.mxu0 %v1631_v15 }
  0xf3   : > { %1255 = vmatpush1.bf16.msra.mxu0 %v1633_v17 }
  0xf4   : > { %v551_v20 = vsel %vm549_vm9, %v545_v13, %v547_v18  ;;  %v548_v21 = vsel %vm330_vm4, %v546_v19, %v547_v18 }
  0xf5   : > { %555 = vst [vmem:[#allocation3 + $0x38] sm:$0x3] %v551_v20  ;;  %v550_v22 = vsel %vm549_vm9, %v543_v14, %v548_v21  ;;  %v576_v23 = vpop.permute.xlu1 %575  ;;  %v574_v24 = vpop.permute.xlu0 %573 }
  0xf6   : > { %554 = vst [vmem:[#allocation3 + $0x30] sm:$0x33] %v550_v22  ;;  %v578_v25 = vrot.slane %v576_v23, 4  ;;  %v577_v26 = vrot.slane %v574_v24, 4 }
  0xf8   : > { %v582_v27 = vsel %vm580_vm10, %v576_v23, %v578_v25  ;;  %v579_v28 = vsel %vm330_vm4, %v577_v26, %v578_v25  ;;  %v1634_v29 = vld [vmem:[#allocation3 + $0x20] ss:$12 sps:$4 sm:$0xff]  }
  0xf9   : > { %586 = vst [vmem:[#allocation3 + $0x38] sm:$0xc] %v582_v27  ;;  %v581_v30 = vsel %vm580_vm10, %v574_v24, %v579_v28  ;;  %v607_v31 = vpop.permute.xlu1 %606  ;;  %v605_v32 = vpop.permute.xlu0 %604  ;;  %v1635_v33 = vld [vmem:[#allocation3 + $0x1c] ss:$12 sps:$4 sm:$0xff]   ;;  %v1637_v34 = vld [vmem:[#allocation3 + $0x18] ss:$12 sps:$4 sm:$0xff]   ;;  %1515 = vmatpush3.bf16.msra.mxu1 %v1634_v29 }
  0xfa   : > { %585 = vst [vmem:[#allocation3 + $0x30] sm:$0xcc] %v581_v30  ;;  %v609_v35 = vrot.slane %v607_v31, 4  ;;  %v608_v36 = vrot.slane %v605_v32, 4  ;;  %1256 = vmatprep.subr.bf16.mxu0 %v1635_v33  ;;  %1516 = vmatprep.subr.bf16.mxu1 %v1817_v16  ;;  %vm797_vm10 = vcmask 384000  }
  0xfb   : > { %1257 = vmatpush1.bf16.msra.mxu0 %v1637_v34 }
  0xfc   : > { %v613_v37 = vsel %vm611_vm11, %v607_v31, %v609_v35  ;;  %v610_v38 = vsel %vm330_vm4, %v608_v36, %v609_v35 }
  0xfd   : > { %617 = vst [vmem:[#allocation3 + $0x44] sm:$0x3] %v613_v37  ;;  %v612_v39 = vsel %vm611_vm11, %v605_v32, %v610_v38  ;;  %v638_v40 = vpop.permute.xlu1 %637  ;;  %v636_v41 = vpop.permute.xlu0 %635  ;;  %vm828_vm11 = vcmask 375808  }
  0xfe   : > { %616 = vst [vmem:[#allocation3 + $0x3c] sm:$0x33] %v612_v39  ;;  %v640_v42 = vrot.slane %v638_v40, 4  ;;  %v639_v43 = vrot.slane %v636_v41, 4 }
 0x100   : > { %v644_v44 = vsel %vm642_vm12, %v638_v40, %v640_v42  ;;  %v641_v45 = vsel %vm330_vm4, %v639_v43, %v640_v42 }
 0x101   : > { %648 = vst [vmem:[#allocation3 + $0x44] sm:$0xc] %v644_v44  ;;  %v643_v46 = vsel %vm642_vm12, %v636_v41, %v641_v45  ;;  %v669_v47 = vpop.permute.xlu1 %668  ;;  %v667_v48 = vpop.permute.xlu0 %666 }
 0x102   : > { %647 = vst [vmem:[#allocation3 + $0x3c] sm:$0xcc] %v643_v46  ;;  %v671_v49 = vrot.slane %v669_v47, 4  ;;  %v670_v50 = vrot.slane %v667_v48, 4 }
 0x104   : > { %v675_v51 = vsel %vm673_vm13, %v669_v47, %v671_v49  ;;  %v672_v52 = vsel %vm330_vm4, %v670_v50, %v671_v49 }
 0x105   : > { %679 = vst [vmem:[#allocation3 + $0x50] sm:$0x3] %v675_v51  ;;  %v674_v53 = vsel %vm673_vm13, %v667_v48, %v672_v52  ;;  %v700_v54 = vpop.permute.xlu1 %699  ;;  %v698_v55 = vpop.permute.xlu0 %697 }
 0x106   : > { %678 = vst [vmem:[#allocation3 + $0x48] sm:$0x33] %v674_v53  ;;  %v702_v56 = vrot.slane %v700_v54, 4  ;;  %v701_v57 = vrot.slane %v698_v55, 4 }
 0x108   : > { %v706_v58 = vsel %vm704_vm14, %v700_v54, %v702_v56  ;;  %v703_v59 = vsel %vm330_vm4, %v701_v57, %v702_v56  ;;  %v1638_v60 = vld [vmem:[#allocation3 + $0x38] ss:$12 sps:$4 sm:$0xff]  }
 0x109   : > { %710 = vst [vmem:[#allocation3 + $0x50] sm:$0xc] %v706_v58  ;;  %v705_v61 = vsel %vm704_vm14, %v698_v55, %v703_v59  ;;  %v731_v62 = vpop.permute.xlu1 %730  ;;  %v729_v63 = vpop.permute.xlu0 %728  ;;  %v1639_v0 = vld [vmem:[#allocation3 + $0x34] ss:$12 sps:$4 sm:$0xff]   ;;  %v1641_v1 = vld [vmem:[#allocation3 + $0x30] ss:$12 sps:$4 sm:$0xff]   ;;  %1517 = vmatpush3.bf16.msra.mxu1 %v1638_v60 }
 0x10a   : > { %709 = vst [vmem:[#allocation3 + $0x48] sm:$0xcc] %v705_v61  ;;  %v733_v2 = vrot.slane %v731_v62, 4  ;;  %v732_v3 = vrot.slane %v729_v63, 4  ;;  %1258 = vmatprep.subr.bf16.mxu0 %v1639_v0  ;;  %1518 = vmatprep.subr.bf16.mxu1 %v1817_v16 }
 0x10b   : > { %1259 = vmatpush1.bf16.msra.mxu0 %v1641_v1 }
 0x10c   : > { %v737_v4 = vsel %vm735_vm15, %v731_v62, %v733_v2  ;;  %v734_v5 = vsel %vm330_vm4, %v732_v3, %v733_v2 }
 0x10d   : > { %741 = vst [vmem:[#allocation3 + $0x5c] sm:$0x3] %v737_v4  ;;  %v736_v6 = vsel %vm735_vm15, %v729_v63, %v734_v5  ;;  %v762_v7 = vpop.permute.xlu1 %761  ;;  %v760_v8 = vpop.permute.xlu0 %759 }
 0x10e   : > { %740 = vst [vmem:[#allocation3 + $0x54] sm:$0x33] %v736_v6  ;;  %v764_v9 = vrot.slane %v762_v7, 4  ;;  %v763_v10 = vrot.slane %v760_v8, 4 }
 0x110   : > { %v768_v11 = vsel %vm766_vm0, %v762_v7, %v764_v9  ;;  %v765_v12 = vsel %vm330_vm4, %v763_v10, %v764_v9 }
 0x111   : > { %772 = vst [vmem:[#allocation3 + $0x5c] sm:$0xc] %v768_v11  ;;  %v767_v13 = vsel %vm766_vm0, %v760_v8, %v765_v12  ;;  %v793_v14 = vpop.permute.xlu1 %792  ;;  %v791_v15 = vpop.permute.xlu0 %790 }
 0x112   : > { %771 = vst [vmem:[#allocation3 + $0x54] sm:$0xcc] %v767_v13  ;;  %v795_v17 = vrot.slane %v793_v14, 4  ;;  %v794_v18 = vrot.slane %v791_v15, 4 }
 0x114   : > { %v799_v19 = vsel %vm797_vm10, %v793_v14, %v795_v17  ;;  %v796_v20 = vsel %vm330_vm4, %v794_v18, %v795_v17 }
 0x115   : > { %803 = vst [vmem:[#allocation3 + $0x68] sm:$0x3] %v799_v19  ;;  %v798_v21 = vsel %vm797_vm10, %v791_v15, %v796_v20  ;;  %v824_v22 = vpop.permute.xlu1 %823  ;;  %v822_v23 = vpop.permute.xlu0 %821 }
 0x116   : > { %802 = vst [vmem:[#allocation3 + $0x60] sm:$0x33] %v798_v21  ;;  %v826_v24 = vrot.slane %v824_v22, 4  ;;  %v825_v25 = vrot.slane %v822_v23, 4 }
 0x118   : > { %v830_v26 = vsel %vm828_vm11, %v824_v22, %v826_v24  ;;  %v827_v27 = vsel %vm330_vm4, %v825_v25, %v826_v24  ;;  %v1642_v28 = vld [vmem:[#allocation3 + $0x50] ss:$12 sps:$4 sm:$0xff]  }
 0x119   : > { %834 = vst [vmem:[#allocation3 + $0x68] sm:$0xc] %v830_v26  ;;  %v829_v29 = vsel %vm828_vm11, %v822_v23, %v827_v27  ;;  %v876_v30 = vpop.permute.xlu1 %875  ;;  %v874_v31 = vpop.permute.xlu0 %873  ;;  %v1643_v32 = vld [vmem:[#allocation3 + $0x4c] ss:$12 sps:$4 sm:$0xff]   ;;  %v1645_v33 = vld [vmem:[#allocation3 + $0x48] ss:$12 sps:$4 sm:$0xff]   ;;  %1519 = vmatpush3.bf16.msra.mxu1 %v1642_v28 }
 0x11a   : > { %833 = vst [vmem:[#allocation3 + $0x60] sm:$0xcc] %v829_v29  ;;  %v878_v34 = vrot.slane %v876_v30, 4  ;;  %v877_v35 = vrot.slane %v874_v31, 4  ;;  %1260 = vmatprep.subr.bf16.mxu0 %v1643_v32  ;;  %1520 = vmatprep.subr.bf16.mxu1 %v1817_v16 }
 0x11b   : > { %1261 = vmatpush1.bf16.msra.mxu0 %v1645_v33 }
 0x11c   : > { %v881_v36 = vsel %vm332_vm1, %v876_v30, %v878_v34  ;;  %v879_v37 = vsel %vm330_vm4, %v877_v35, %v878_v34 }
 0x11d   : > { %885 = vst [vmem:[#allocation3 + $0x74] sm:$0xc] %v881_v36  ;;  %v880_v38 = vsel %vm332_vm1, %v874_v31, %v879_v37  ;;  %v906_v39 = vpop.permute.xlu1 %905  ;;  %v904_v40 = vpop.permute.xlu0 %903  ;;  %vm1244_vm1 = vcmask 1045504  }
 0x11e   : > { %884 = vst [vmem:[#allocation3 + $0x6c] sm:$0xcc] %v880_v38  ;;  %v908_v41 = vrot.slane %v906_v39, 4  ;;  %v907_v42 = vrot.slane %v904_v40, 4 }
 0x120   : > { %v911_v43 = vsel %vm363_vm5, %v906_v39, %v908_v41  ;;  %v909_v44 = vsel %vm330_vm4, %v907_v42, %v908_v41 }
 0x121   : > { %915 = vst [vmem:[#allocation3 + $0x80] sm:$0x3] %v911_v43  ;;  %v910_v45 = vsel %vm363_vm5, %v904_v40, %v909_v44  ;;  %v936_v46 = vpop.permute.xlu1 %935  ;;  %v934_v47 = vpop.permute.xlu0 %933 }
 0x122   : > { %914 = vst [vmem:[#allocation3 + $0x78] sm:$0x33] %v910_v45  ;;  %v938_v48 = vrot.slane %v936_v46, 4  ;;  %v937_v49 = vrot.slane %v934_v47, 4 }
 0x124   : > { %v941_v50 = vsel %vm394_vm2, %v936_v46, %v938_v48  ;;  %v939_v51 = vsel %vm330_vm4, %v937_v49, %v938_v48  ;;  %v1647_v52 = vld [vmem:[#allocation3 + $0x68] ss:$12 sps:$4 sm:$0xff]  }
 0x125   : > { %945 = vst [vmem:[#allocation3 + $0x80] sm:$0xc] %v941_v50  ;;  %v940_v53 = vsel %vm394_vm2, %v934_v47, %v939_v51  ;;  %v966_v54 = vpop.permute.xlu1 %965  ;;  %v964_v55 = vpop.permute.xlu0 %963  ;;  %v1648_v56 = vld [vmem:[#allocation3 + $0x64] ss:$12 sps:$4 sm:$0xff]   ;;  %v1650_v57 = vld [vmem:[#allocation3 + $0x60] ss:$12 sps:$4 sm:$0xff]   ;;  %1521 = vmatpush3.bf16.msra.mxu1 %v1647_v52 }
 0x126   : > { %944 = vst [vmem:[#allocation3 + $0x78] sm:$0xcc] %v940_v53  ;;  %v968_v58 = vrot.slane %v966_v54, 4  ;;  %v967_v59 = vrot.slane %v964_v55, 4  ;;  %1262 = vmatprep.subr.bf16.mxu0 %v1648_v56  ;;  %1522 = vmatprep.subr.bf16.mxu1 %v1817_v16  ;;  %vm1240_vm2 = vcmask 883712  }
 0x127   : > { %1263 = vmatpush1.bf16.msra.mxu0 %v1650_v57 }
 0x128   : > { %v971_v60 = vsel %vm425_vm6, %v966_v54, %v968_v58  ;;  %v969_v61 = vsel %vm330_vm4, %v967_v59, %v968_v58 }
 0x129   : > { %975 = vst [vmem:[#allocation3 + $0x8c] sm:$0x3] %v971_v60  ;;  %v970_v62 = vsel %vm425_vm6, %v964_v55, %v969_v61  ;;  %v996_v63 = vpop.permute.xlu1 %995  ;;  %v994_v0 = vpop.permute.xlu0 %993 }
 0x12a   : > { %974 = vst [vmem:[#allocation3 + $0x84] sm:$0x33] %v970_v62  ;;  %v998_v1 = vrot.slane %v996_v63, 4  ;;  %v997_v2 = vrot.slane %v994_v0, 4 }
 0x12c   : > { %v1001_v3 = vsel %vm456_vm3, %v996_v63, %v998_v1  ;;  %v999_v4 = vsel %vm330_vm4, %v997_v2, %v998_v1 }
 0x12d   : > { %1005 = vst [vmem:[#allocation3 + $0x8c] sm:$0xc] %v1001_v3  ;;  %v1000_v5 = vsel %vm456_vm3, %v994_v0, %v999_v4  ;;  %v1026_v6 = vpop.permute.xlu1 %1025  ;;  %v1024_v7 = vpop.permute.xlu0 %1023 }
 0x12e   : > { %1004 = vst [vmem:[#allocation3 + $0x84] sm:$0xcc] %v1000_v5  ;;  %v1028_v8 = vrot.slane %v1026_v6, 4  ;;  %v1027_v9 = vrot.slane %v1024_v7, 4 }
 0x130   : > { %v1031_v10 = vsel %vm487_vm7, %v1026_v6, %v1028_v8  ;;  %v1029_v11 = vsel %vm330_vm4, %v1027_v9, %v1028_v8 }
 0x131   : > { %1035 = vst [vmem:[#allocation3 + $0x98] sm:$0x3] %v1031_v10  ;;  %v1030_v12 = vsel %vm487_vm7, %v1024_v7, %v1029_v11  ;;  %v1056_v13 = vpop.permute.xlu1 %1055  ;;  %v1054_v14 = vpop.permute.xlu0 %1053 }
 0x132   : > { %1034 = vst [vmem:[#allocation3 + $0x90] sm:$0x33] %v1030_v12  ;;  %v1058_v15 = vrot.slane %v1056_v13, 4  ;;  %v1057_v17 = vrot.slane %v1054_v14, 4 }
 0x134   : > { %v1061_v18 = vsel %vm518_vm8, %v1056_v13, %v1058_v15  ;;  %v1059_v19 = vsel %vm330_vm4, %v1057_v17, %v1058_v15  ;;  %v1651_v20 = vld [vmem:[#allocation3 + $0x80] ss:$12 sps:$4 sm:$0xff]  }
 0x135   : > { %1065 = vst [vmem:[#allocation3 + $0x98] sm:$0xc] %v1061_v18  ;;  %v1060_v21 = vsel %vm518_vm8, %v1054_v14, %v1059_v19  ;;  %v1086_v22 = vpop.permute.xlu1 %1085  ;;  %v1084_v23 = vpop.permute.xlu0 %1083  ;;  %v1652_v24 = vld [vmem:[#allocation3 + $0x7c] ss:$12 sps:$4 sm:$0xff]   ;;  %v1654_v25 = vld [vmem:[#allocation3 + $0x78] ss:$12 sps:$4 sm:$0xff]   ;;  %1523 = vmatpush3.bf16.msra.mxu1 %v1651_v20 }
 0x136   : > { %1064 = vst [vmem:[#allocation3 + $0x90] sm:$0xcc] %v1060_v21  ;;  %v1088_v26 = vrot.slane %v1086_v22, 4  ;;  %v1087_v27 = vrot.slane %v1084_v23, 4  ;;  %1264 = vmatprep.subr.bf16.mxu0 %v1652_v24  ;;  %1524 = vmatprep.subr.bf16.mxu1 %v1817_v16  ;;  %v1096_v16 = vld [vmem:[%s2207_s2] sm:$0xf] }
 0x137   : > { %1265 = vmatpush1.bf16.msra.mxu0 %v1654_v25 }
 0x138   : > { %v1091_v28 = vsel %vm549_vm9, %v1086_v22, %v1088_v26  ;;  %v1089_v29 = vsel %vm330_vm4, %v1087_v27, %v1088_v26 }
 0x139   : > { %1095 = vst [vmem:[#allocation3 + $0xa4] sm:$0x3] %v1091_v28  ;;  %v1090_v30 = vsel %vm549_vm9, %v1084_v23, %v1089_v29 }
 0x13a   : > { %1094 = vst [vmem:[#allocation3 + $0x9c] sm:$0x33] %v1090_v30 }
 0x140   : > { %v1657_v31 = vld [vmem:[#allocation3 + $0x98] ss:$12 sps:$4 sm:$0x3f]  }
 0x141   : > { %v1655_v32 = vld [vmem:[#allocation3 + $0x94] ss:$12 sps:$4 sm:$0x3f]   ;;  %v1252_v33 = vsel %vm1244_vm1, %v1657_v31, 0 }
 0x142   : > { %v1658_v34 = vld [vmem:[#allocation3 + $0x90] ss:$12 sps:$4 sm:$0x3f]   ;;  %1498 = vmatprep.subr.msk.bf16.mxu0 %vm1244_vm1, %v1655_v32  ;;  %1525 = vmatpush3.bf16.msra.mxu1 %v1252_v33 }
 0x143   : > { %v1246_v35 = vsel %vm1244_vm1, %v1658_v34, 0 }
 0x144   : > { %1267 = vmatpush1.bf16.msra.mxu0 %v1246_v35 }
 0x145   : > { %1527 = vmatmul.mubr.msk.bf16.vlgmr.msra.gmra.mrb[0].mxu1 %vm1240_vm2, %v1096_v16 }
 0x146   : > { %v1129_v36 = vpop.permute.xlu0 %1128 }
 0x147   : > { %1499 = vmatmul.mubr.msk.bf16.vlgmr.msra.gmra.mrb[0].mxu0 %vm1240_vm2, %v1096_v16 }
 0x218   : > { %v1329_v37 = vpop.f32.mrb[0].mxu1 }
 0x219   : > { %v1330_v38 = vadd.f32 %v1329_v37, %v1129_v36  ;;  %v1528_v39 = vpop.f32.mrb[1].mxu1 }
 0x21a   : > { %v1288_v40 = vpop.f32.mrb[0].mxu0  ;;  %v1332_v41 = vpop.f32.mrb[2].mxu1 }
 0x21b   : > { %1337 = vst [vmem:[%s276_s5 + $0x10] sm:$0xff] %v1330_v38  ;;  %v1289_v42 = vadd.f32 %v1288_v40, %v1129_v36  ;;  %v1290_v43 = vpop.f32.mrb[1].mxu0  ;;  %v1529_v44 = vpop.f32.mrb[3].mxu1 }
 0x21c   : > { %v1291_v45 = vadd.f32 %v1290_v43, %v1129_v36  ;;  %v1292_v46 = vpop.f32.mrb[2].mxu0 }
 0x21d   : > { %1335 = vst [vmem:[%s276_s5] sm:$0xff] %v1289_v42  ;;  %v1293_v47 = vpop.f32.mrb[3].mxu0 }
 0x21e   : > { %1336 = vst [vmem:[%s276_s5 + $0x8] sm:$0xff] %v1291_v45 }
 0x21f   : > { %1733 = shalt.err (!%p1730_p9)
}
 0x220   : > { %s1734_s13 = scalar_lea.hbm %s2156_s24, 384  ;;  %s1738_s22 = scalar_lea.hbm %s2209_s4, 768 }
 0x221   : > { %p1735_p1 = scmp.ne.s32.totalorder %s2156_s24, %s1734_s13  ;;  %p1739_p4 = scmp.lt.u32.totalorder %s2156_s24, %s2209_s4 }
 0x222   : > { %p1740_p13 = scmp.lt.u32.totalorder %s1738_s22, %s1734_s13  ;;  %p1742_p8 = scmp.lt.u32.totalorder %s1734_s13, %s2156_s24 }
 0x223   : > { %p1736_p5 = pnand %p1735_p1, %p2221_p0 }
 0x224   : > { %p1741_p3 = por %p1740_p13, %p1739_p4 }
 0x225   : > { %p1737_p2 = pneg %p1736_p5 }
 0x226   : > { %p1743_p11 = por %p1742_p8, %p1741_p3 }
 0x228   : > { %p1744_p6 = pnand %p1743_p11, %p1737_p2 }
 0x22a   : > { %1747 = shalt.err (!%p1744_p6)
}
 0x22b   : > { %1540 = dma.vmem_to_hbm [thread:$0]  (%p2221_p0), %s2158_s6, 384, %s2156_s24, %s1339_s18  }
 0x22c PF: > { %s1367_s25 = sand.u32 1, %s1786_s15   ;;  %p2222_p7 = scmp.ne.s32.totalorder %s2215_s30, 0 }
 0x22d   : > { %p2223_p10 = scmp.ge.s32.totalorder %s1806_s20, 2  ;;  %s1368_s5 = scalar_lea.sflag [#allocation6], %s1367_s25 }
 0x22f   : > { %p1550_p12 = pnand %p2223_p10, %p2222_p7 }
 0x231   : > { %1781 = dma.done.wait (!%p1550_p12), %s1368_s5, 384  }
 0x232   : > { %1783 = vsyncadd (!%p1550_p12), %s1368_s5, 4294966912  ;;  %s23_s20 = sadd.s32 1, %s1806_s20   ;;  %s2224_s15 = smov %s1790_s16 }
 0x233   : > { %p20_p9 = scmp.ge.s32.totalorder %s23_s20, 4   ;;  %s2225_s16 = smov %s1794_s17 }
 0x234   : > { %s2226_s17 = smov %s1913_s29  ;;  %s2227_s18 = smov %s1802_s19 }
 0x235   : > { %s2228_s19 = smov %s2230_s23  ;;  %22 = sbr.rel (!%p20_p9) target bundleno = 8 (0x8), region = 94 }
 0x23c   :  { %1373 = vsyncpa [#allocation5], 1 }
 0x23d   :  { %1375 = vsyncpa [#allocation5 + $0x1], 1 }
 0x23e   :  { %1376 = vsyncpa [#allocation8], 1 }
 0x23f   :  { %1378 = vsyncpa [#allocation8 + $0x1], 1 }
 0x240   :  { %1379 = vsyncpa [#allocation6], 1 }
 0x241   :  { %1381 = vsyncpa [#allocation6 + $0x1], 1 }

</bundles_post_ra>
